<compile_context>
chip_gen: v7x
topology: tpu7x:2x2x1
jax: 0.10.0
libtpu: 0.0.40
codegen_flags: <defaults>
</compile_context>

<pallas_src>
import functools

import jax
import jax.numpy as jnp
from jax.experimental import pallas as pl
from jax.experimental.pallas import tpu as pltpu


def _round_up(n, m):
    return ((n + m - 1) // m) * m


def _row_tiling(rows, tile_rows):
    """Balanced row tiles: tm is a multiple of 8 and total padding < tm."""
    n_tiles = max(1, -(-rows // tile_rows))
    tm = _round_up(-(-rows // n_tiles), 8)
    rows_p = _round_up(rows, tm)
    return tm, rows_p


# --------------------------------------------------------------------------- #
# Kernel 1: row-tiled affine projection  out = x @ w + b   (layer-1 gates)
# --------------------------------------------------------------------------- #
def _linear_kernel(x_ref, w_ref, b_ref, o_ref):
    # bf16 MXU operands (weights already bf16), f32 accumulation, f32 bias add.
    acc = jnp.dot(x_ref[...].astype(jnp.bfloat16), w_ref[...],
                  preferred_element_type=jnp.float32)
    o_ref[...] = (acc + b_ref[...]).astype(o_ref.dtype)


def pallas_linear(x2d, w, b, *, tile_rows=512):
    """(rows, K) @ (K, N) + (N,) -> (rows, N), row-tiled, parallel grid axis."""
    rows, k = x2d.shape
    n = w.shape[1]
    tm, rows_p = _row_tiling(rows, tile_rows)
    if rows_p != rows:
        x2d = jnp.pad(x2d, ((0, rows_p - rows), (0, 0)))
    w_bf = w.astype(jnp.bfloat16)                      # halves weight residency

    out = pl.pallas_call(
        _linear_kernel,
        out_shape=jax.ShapeDtypeStruct((rows_p, n), jnp.float32),
        grid=(rows_p // tm,),
        in_specs=[
            pl.BlockSpec((tm, k), lambda i: (i, 0)),   # activations (tiled rows)
            pl.BlockSpec((k, n), lambda i: (0, 0)),    # weight: VMEM resident
            pl.BlockSpec((1, n), lambda i: (0, 0)),    # bias:   VMEM resident
        ],
        out_specs=pl.BlockSpec((tm, n), lambda i: (i, 0)),
        compiler_params=pltpu.CompilerParams(
            dimension_semantics=("parallel",)),
        cost_estimate=pl.CostEstimate(
            flops=2 * rows_p * k * n, transcendentals=0,
            bytes_accessed=4 * rows_p * (k + n) + 2 * k * n),
    )(x2d, w_bf, b.reshape(1, n))
    return out[:rows]


# --------------------------------------------------------------------------- #
# Kernel 2: affine projection fed by direction-major hidden states
#           out = [h_f | h_b] @ W + b  without materializing the concat
# --------------------------------------------------------------------------- #
def _bidir_linear_kernel(x_ref, wf_ref, wb_ref, b_ref, o_ref):
    xf = x_ref[0].astype(jnp.bfloat16)
    xb = x_ref[1].astype(jnp.bfloat16)
    acc = jnp.dot(xf, wf_ref[...], preferred_element_type=jnp.float32)
    acc = acc + jnp.dot(xb, wb_ref[...], preferred_element_type=jnp.float32)
    o_ref[...] = (acc + b_ref[...]).astype(o_ref.dtype)


def pallas_bidir_linear(x_dir, w, b, *, tile_rows=512):
    """x_dir: (2, rows, H) direction-major hidden states.
    w: (2H, N) whose rows [0:H] / [H:2H] multiply the fwd / bwd halves."""
    _, rows, h = x_dir.shape
    n = w.shape[1]
    tm, rows_p = _row_tiling(rows, tile_rows)
    if rows_p != rows:
        x_dir = jnp.pad(x_dir, ((0, 0), (0, rows_p - rows), (0, 0)))
    wf = w[:h].astype(jnp.bfloat16)
    wb = w[h:].astype(jnp.bfloat16)

    out = pl.pallas_call(
        _bidir_linear_kernel,
        out_shape=jax.ShapeDtypeStruct((rows_p, n), jnp.float32),
        grid=(rows_p // tm,),
        in_specs=[
            pl.BlockSpec((2, tm, h), lambda i: (0, i, 0)),
            pl.BlockSpec((h, n), lambda i: (0, 0)),
            pl.BlockSpec((h, n), lambda i: (0, 0)),
            pl.BlockSpec((1, n), lambda i: (0, 0)),
        ],
        out_specs=pl.BlockSpec((tm, n), lambda i: (i, 0)),
        compiler_params=pltpu.CompilerParams(
            dimension_semantics=("parallel",)),
        cost_estimate=pl.CostEstimate(
            flops=4 * rows_p * h * n, transcendentals=0,
            bytes_accessed=4 * rows_p * (2 * h + n) + 4 * h * n),
    )(x_dir, wf, wb, b.reshape(1, n))
    return out[:rows]


# --------------------------------------------------------------------------- #
# Kernel 3: fused bidirectional LSTM recurrence (in-kernel time loop)
# --------------------------------------------------------------------------- #
def _bilstm_kernel(gates_ref, whh_ref, h_out_ref, *, hidden, seq_len):
    d = pl.program_id(0)                       # 0 = forward sweep, 1 = backward
    H = hidden
    G = 4 * H
    B = h_out_ref.shape[1]
    whh = whh_ref[...]                         # (H, 4H) f32, loaded once

    # g-gate lane mask, hoisted out of the time loop: one full-tile sigmoid + one
    # full-tile tanh + a per-lane select instead of four narrow sub-vreg slices.
    lane = jax.lax.broadcasted_iota(jnp.int32, (B, G), 1)
    g_mask = (lane >= 2 * H) & (lane < 3 * H)

    h0 = jnp.zeros((B, H), jnp.float32)        # per-direction carry reset
    c0 = jnp.zeros((B, H), jnp.float32)

    def step(s, carry):
        h_prev, c_prev = carry
        t = jnp.where(d == 0, s, seq_len - 1 - s)
        gx = gates_ref[t][:, :G]               # (B, 4H); identity slice when Gp==4H
        # Recurrent dot kept in f32: (B,H)@(H,4H) is latency-bound (tiny B), bf16
        # buys nothing here and f32 keeps the sequential numerics tight.
        gates = gx + jnp.dot(h_prev, whh, preferred_element_type=jnp.float32)
        act = jnp.where(g_mask, jnp.tanh(gates), jax.nn.sigmoid(gates))
        i_g = act[:, 0 * H:1 * H]
        f_g = act[:, 1 * H:2 * H]
        g_g = act[:, 2 * H:3 * H]
        o_g = act[:, 3 * H:4 * H]
        c_new = f_g * c_prev + i_g * g_g
        h_new = o_g * jnp.tanh(c_new)
        h_out_ref[t] = h_new.astype(h_out_ref.dtype)   # VMEM store; bulk HBM writeback
        return (h_new, c_new)

    jax.lax.fori_loop(0, seq_len, step, (h0, c0))


def bilstm_recurrence(gates, w_hh_stacked, *, hidden):
    """gates: (T, B, 2*Gp): fwd gates in lanes [0:4H] of the first Gp block,
    bwd gates in the second (Gp = round_up(4H,128)); input contribution + bias
    already included.  w_hh_stacked: (2, H, 4H).  Returns (2, T, B, H)."""
    T, B, two_gp = gates.shape
    Gp = two_gp // 2
    H = hidden
    return pl.pallas_call(
        functools.partial(_bilstm_kernel, hidden=H, seq_len=T),
        out_shape=jax.ShapeDtypeStruct((2, T, B, H), jnp.float32),
        grid=(2,),
        in_specs=[
            # Full time extent resident in VMEM; the direction picks the lane block.
            pl.BlockSpec((T, B, Gp), lambda d: (0, 0, d)),
            pl.BlockSpec((None, H, 4 * H), lambda d: (d, 0, 0)),
        ],
        out_specs=pl.BlockSpec((None, T, B, H), lambda d: (d, 0, 0, 0)),
        compiler_params=pltpu.CompilerParams(
            # Directions are independent: "parallel" lets v7x use both TensorCores;
            # on v5e/v6e (1 TC) they simply run back to back.
            dimension_semantics=("parallel",)),
    )(gates, w_hh_stacked)


# --------------------------------------------------------------------------- #
# Kernel 4: fused out_projection + ResidualNet + residual add (direction-major in)
# --------------------------------------------------------------------------- #
def _head_kernel(y_ref, wpf_ref, wpb_ref, bp_ref, w1_ref, b1_ref, w2_ref, b2_ref,
                 o_ref):
    yf = y_ref[0].astype(jnp.bfloat16)
    yb = y_ref[1].astype(jnp.bfloat16)
    initial = (jnp.dot(yf, wpf_ref[...], preferred_element_type=jnp.float32)
               + jnp.dot(yb, wpb_ref[...], preferred_element_type=jnp.float32)
               + bp_ref[...])
    r1 = jnp.maximum(
        jnp.dot(initial.astype(jnp.bfloat16), w1_ref[...],
                preferred_element_type=jnp.float32) + b1_ref[...], 0.0)
    r2 = jnp.dot(r1.astype(jnp.bfloat16), w2_ref[...],
                 preferred_element_type=jnp.float32) + b2_ref[...]
    o_ref[...] = (initial + r2).astype(o_ref.dtype)


def pallas_head(y_dir, wp, bp, w1, b1, w2, b2, *, tile_rows=512, lane=128):
    """y_dir: (2, rows, H) direction-major BLSTM output. wp: (2H, C)."""
    _, rows, h = y_dir.shape
    c = wp.shape[1]
    hd = w1.shape[1]
    cp = _round_up(c, lane)
    hdp = _round_up(hd, lane)

    # Lane-dense zero padding of feature dims (exact: padded rows/cols are zero).
    wpf = jnp.pad(wp[:h], ((0, 0), (0, cp - c))).astype(jnp.bfloat16)
    wpb = jnp.pad(wp[h:], ((0, 0), (0, cp - c))).astype(jnp.bfloat16)
    bp_p = jnp.pad(bp, (0, cp - c)).reshape(1, cp)
    w1_p = jnp.pad(w1, ((0, cp - c), (0, hdp - hd))).astype(jnp.bfloat16)
    b1_p = jnp.pad(b1, (0, hdp - hd)).reshape(1, hdp)
    w2_p = jnp.pad(w2, ((0, hdp - hd), (0, cp - c))).astype(jnp.bfloat16)
    b2_p = jnp.pad(b2, (0, cp - c)).reshape(1, cp)

    tm, rows_p = _row_tiling(rows, tile_rows)
    if rows_p != rows:
        y_dir = jnp.pad(y_dir, ((0, 0), (0, rows_p - rows), (0, 0)))

    out = pl.pallas_call(
        _head_kernel,
        out_shape=jax.ShapeDtypeStruct((rows_p, cp), jnp.float32),
        grid=(rows_p // tm,),
        in_specs=[
            pl.BlockSpec((2, tm, h), lambda i: (0, i, 0)),   # activations
            pl.BlockSpec((h, cp), lambda i: (0, 0)),         # Wp (fwd half)
            pl.BlockSpec((h, cp), lambda i: (0, 0)),         # Wp (bwd half)
            pl.BlockSpec((1, cp), lambda i: (0, 0)),          # bp
            pl.BlockSpec((cp, hdp), lambda i: (0, 0)),        # W1
            pl.BlockSpec((1, hdp), lambda i: (0, 0)),         # b1
            pl.BlockSpec((hdp, cp), lambda i: (0, 0)),        # W2
            pl.BlockSpec((1, cp), lambda i: (0, 0)),          # b2
        ],
        out_specs=pl.BlockSpec((tm, cp), lambda i: (i, 0)),
        compiler_params=pltpu.CompilerParams(
            dimension_semantics=("parallel",)),
        cost_estimate=pl.CostEstimate(
            flops=2 * rows_p * (2 * h * cp + cp * hdp + hdp * cp),
            transcendentals=0,
            bytes_accessed=4 * rows_p * (2 * h + cp)
            + 2 * (2 * h * cp + 2 * cp * hdp)),
    )(y_dir, wpf, wpb, bp_p, w1_p, b1_p, w2_p, b2_p)
    return out[:rows, :c]


# --------------------------------------------------------------------------- #
# Full forward pass (mirrors BLSTMResConversionModel.forward)
# --------------------------------------------------------------------------- #
def _pack_gate_weights(w_f, w_b, b_f, b_b, gp):
    """Concatenate fwd/bwd input->gate weights, padding each direction's gate
    block to gp lanes (gp = round_up(4H,128)) so the recurrence BlockSpec is
    lane-dense.  Padded columns are zero (exact, and never read in-kernel)."""
    g = w_f.shape[1]
    w_cat = jnp.concatenate(
        [jnp.pad(w_f, ((0, 0), (0, gp - g))),
         jnp.pad(w_b, ((0, 0), (0, gp - g)))], axis=1)
    b_cat = jnp.concatenate([jnp.pad(b_f, (0, gp - g)),
                             jnp.pad(b_b, (0, gp - g))])
    return w_cat, b_cat


def blstm_res_conversion_forward(x, p):
    """x: (T, B, in_channels) -> (T, B, out_channels)."""
    T, B, _ = x.shape
    H = p["w_hh1_f"].shape[0]
    Gp = _round_up(4 * H, 128)

    # ----- BLSTM layer 1 -----
    w1_cat, b1_cat = _pack_gate_weights(p["w_ih1_f"], p["w_ih1_b"],
                                        p["b1_f"], p["b1_b"], Gp)
    gates1 = pallas_linear(x.reshape(T * B, -1), w1_cat, b1_cat)
    gates1 = gates1.reshape(T, B, 2 * Gp)
    whh1 = jnp.stack([p["w_hh1_f"], p["w_hh1_b"]], axis=0)
    y1 = bilstm_recurrence(gates1, whh1, hidden=H)            # (2, T, B, H)

    # ----- BLSTM layer 2 (consumes direction-major layout; no concat slab) -----
    w2_cat, b2_cat = _pack_gate_weights(p["w_ih2_f"], p["w_ih2_b"],
                                        p["b2_f"], p["b2_b"], Gp)
    gates2 = pallas_bidir_linear(y1.reshape(2, T * B, H), w2_cat, b2_cat)
    gates2 = gates2.reshape(T, B, 2 * Gp)
    whh2 = jnp.stack([p["w_hh2_f"], p["w_hh2_b"]], axis=0)
    y2 = bilstm_recurrence(gates2, whh2, hidden=H)             # (2, T, B, H)

    # ----- out_projection + ResidualNet + residual add -----
    out2d = pallas_head(y2.reshape(2, T * B, H),
                        p["wp"], p["bp"], p["res_w1"], p["res_b1"],
                        p["res_w2"], p["res_b2"])
    return out2d.reshape(T, B, -1)


# --------------------------------------------------------------------------- #
# Pure-JAX reference (HIGHEST precision) for the correctness check
# --------------------------------------------------------------------------- #
_HIGHEST = jax.lax.Precision.HIGHEST


def _mm(a, b):
    return jnp.matmul(a, b, precision=_HIGHEST)


def _lstm_dir_ref(x, w_ih, w_hh, b, reverse):
    T, B, _ = x.shape
    H = w_hh.shape[0]
    h = jnp.zeros((B, H), x.dtype)
    c = jnp.zeros((B, H), x.dtype)
    outs = [None] * T
    order = range(T - 1, -1, -1) if reverse else range(T)
    for t in order:
        g = _mm(x[t], w_ih) + _mm(h, w_hh) + b
        i = jax.nn.sigmoid(g[:, 0 * H:1 * H])
        f = jax.nn.sigmoid(g[:, 1 * H:2 * H])
        gg = jnp.tanh(g[:, 2 * H:3 * H])
        o = jax.nn.sigmoid(g[:, 3 * H:4 * H])
        c = f * c + i * gg
        h = o * jnp.tanh(c)
        outs[t] = h
    return jnp.stack(outs, axis=0)


def blstm_res_conversion_ref(x, p):
    y1 = jnp.concatenate([
        _lstm_dir_ref(x, p["w_ih1_f"], p["w_hh1_f"], p["b1_f"], False),
        _lstm_dir_ref(x, p["w_ih1_b"], p["w_hh1_b"], p["b1_b"], True)], axis=-1)
    y2 = jnp.concatenate([
        _lstm_dir_ref(y1, p["w_ih2_f"], p["w_hh2_f"], p["b2_f"], False),
        _lstm_dir_ref(y1, p["w_ih2_b"], p["w_hh2_b"], p["b2_b"], True)], axis=-1)
    initial = _mm(y2, p["wp"]) + p["bp"]
    resid = _mm(jnp.maximum(_mm(initial, p["res_w1"]) + p["res_b1"], 0.0),
                p["res_w2"]) + p["res_b2"]
    return initial + resid


if __name__ == "__main__":
    # Shapes consistent with the module: x is [time, batch, features].
    T, B = 8, 2
    in_channels, out_channels = 32, 16
    lstm_hidden, hidden_dim = 32, 32
    H = lstm_hidden

    key = jax.random.PRNGKey(0)
    keys = jax.random.split(key, 20)

    def rnd(k, shape, scale=0.2):
        return jax.random.normal(k, shape, dtype=jnp.float32) * scale

    # Synthetic parameters.  LSTM weights stored transposed relative to PyTorch
    # ((I, 4H) / (H, 4H)); the two PyTorch biases are folded into one (4H,) bias
    # per direction (b = b_ih + b_hh).  Gate order is PyTorch's (i, f, g, o).
    params = {
        "w_ih1_f": rnd(keys[0], (in_channels, 4 * H)),
        "w_hh1_f": rnd(keys[1], (H, 4 * H)),
        "b1_f":    rnd(keys[2], (4 * H,)),
        "w_ih1_b": rnd(keys[3], (in_channels, 4 * H)),
        "w_hh1_b": rnd(keys[4], (H, 4 * H)),
        "b1_b":    rnd(keys[5], (4 * H,)),
        "w_ih2_f": rnd(keys[6], (2 * H, 4 * H)),
        "w_hh2_f": rnd(keys[7], (H, 4 * H)),
        "b2_f":    rnd(keys[8], (4 * H,)),
        "w_ih2_b": rnd(keys[9], (2 * H, 4 * H)),
        "w_hh2_b": rnd(keys[10], (H, 4 * H)),
        "b2_b":    rnd(keys[11], (4 * H,)),
        "wp":     rnd(keys[12], (2 * H, out_channels)),
        "bp":     rnd(keys[13], (out_channels,)),
        "res_w1": rnd(keys[14], (out_channels, hidden_dim)),
        "res_b1": rnd(keys[15], (hidden_dim,)),
        "res_w2": rnd(keys[16], (hidden_dim, out_channels)),
        "res_b2": rnd(keys[17], (out_channels,)),
    }

    x = jax.random.normal(keys[18], (T, B, in_channels), dtype=jnp.float32)

    fwd = jax.jit(blstm_res_conversion_forward)
    out = jax.block_until_ready(fwd(x, params))

    ref = blstm_res_conversion_ref(x, params)
    assert out.shape == (T, B, out_channels), out.shape
    max_err = float(jnp.max(jnp.abs(out - ref)))
    # Tolerance covers intentional bf16 MXU operands on the projection/head matmuls
    # (recurrence math is f32) vs. the HIGHEST-precision f32 reference; semantic
    # errors (gate order, direction, missing residual) are O(0.1) or larger.
    assert max_err < 5e-2, f"max abs err {max_err}"
    print("KERNEL_OK")
</pallas_src>

<mosaic_0001>
module attributes {stable_mosaic.version = 11 : i64} {
  func.func @_linear_kernel(%arg0: i32, %arg1: memref<16x32xf32, #tpu.memory_space<vmem>>, %arg2: memref<32x256xbf16, #tpu.memory_space<vmem>>, %arg3: memref<1x256xf32, #tpu.memory_space<vmem>>, %arg4: memref<16x256xf32, #tpu.memory_space<vmem>>) attributes {dimension_semantics = [#tpu.dimension_semantics<parallel>], iteration_bounds = array<i64: 1>, scalar_prefetch = 0 : i64, scratch_operands = 0 : i64, tpu.core_type = #tpu.core_type<tc>, window_params = [{transform_indices = @transform_0, window_bounds = array<i64: 16, 32>}, {pipeline_mode = #tpu.pipeline_mode<synchronous>, transform_indices = @transform_1, window_bounds = array<i64: 32, 256>}, {pipeline_mode = #tpu.pipeline_mode<synchronous>, transform_indices = @transform_2, window_bounds = array<i64: 1, 256>}, {transform_indices = @transform_3, window_bounds = array<i64: 16, 256>}]} {
    %c0 = arith.constant 0 : index
    %c0_0 = arith.constant 0 : index
    %0 = vector.load %arg1[%c0, %c0_0] : memref<16x32xf32, #tpu.memory_space<vmem>>, vector<16x32xf32>
    %1 = arith.truncf %0 : vector<16x32xf32> to vector<16x32xbf16>
    %c0_1 = arith.constant 0 : index
    %c0_2 = arith.constant 0 : index
    %2 = vector.load %arg2[%c0_1, %c0_2] : memref<32x256xbf16, #tpu.memory_space<vmem>>, vector<32x256xbf16>
    %cst = arith.constant dense<0.000000e+00> : vector<16x256xf32>
    %3 = tpu.matmul %1, %2, %cst {dimension_numbers = #tpu.dot_dimension_numbers<[1], [0], [0], [1], [0, 0, 1, 1], [], []>} : vector<16x32xbf16>, vector<32x256xbf16>, vector<16x256xf32> -> vector<16x256xf32>
    %c0_3 = arith.constant 0 : index
    %c0_4 = arith.constant 0 : index
    %4 = vector.load %arg3[%c0_3, %c0_4] : memref<1x256xf32, #tpu.memory_space<vmem>>, vector<1x256xf32>
    %5 = vector.broadcast %4 : vector<1x256xf32> to vector<16x256xf32>
    %6 = arith.addf %3, %5 : vector<16x256xf32>
    %c0_5 = arith.constant 0 : index
    %c0_6 = arith.constant 0 : index
    %7 = vector.load %arg4[%c0_5, %c0_6] : memref<16x256xf32, #tpu.memory_space<vmem>>, vector<16x256xf32>
    tpu.vector_store %arg4[%c0_5, %c0_6], %6 {strides = array<i32>} : memref<16x256xf32, #tpu.memory_space<vmem>>, vector<16x256xf32>,
    return
  }
  func.func @transform_0(%arg0: i32) -> (i32, i32) {
    %c0_i32 = arith.constant 0 : i32
    %c0_i32_0 = arith.constant 0 : i32
    return %arg0, %c0_i32 : i32, i32
  }
  func.func @transform_1(%arg0: i32) -> (i32, i32) {
    %c0_i32 = arith.constant 0 : i32
    %c0_i32_0 = arith.constant 0 : i32
    %c0_i32_1 = arith.constant 0 : i32
    return %c0_i32, %c0_i32_0 : i32, i32
  }
  func.func @transform_2(%arg0: i32) -> (i32, i32) {
    %c0_i32 = arith.constant 0 : i32
    %c0_i32_0 = arith.constant 0 : i32
    %c0_i32_1 = arith.constant 0 : i32
    return %c0_i32, %c0_i32_0 : i32, i32
  }
  func.func @transform_3(%arg0: i32) -> (i32, i32) {
    %c0_i32 = arith.constant 0 : i32
    %c0_i32_0 = arith.constant 0 : i32
    return %arg0, %c0_i32 : i32, i32
  }
}

module attributes {stable_mosaic.version = 11 : i64} {
  func.func @_bidir_linear_kernel(%arg0: i32, %arg1: memref<2x16x32xf32, #tpu.memory_space<vmem>>, %arg2: memref<32x256xbf16, #tpu.memory_space<vmem>>, %arg3: memref<32x256xbf16, #tpu.memory_space<vmem>>, %arg4: memref<1x256xf32, #tpu.memory_space<vmem>>, %arg5: memref<16x256xf32, #tpu.memory_space<vmem>>) attributes {dimension_semantics = [#tpu.dimension_semantics<parallel>], iteration_bounds = array<i64: 1>, scalar_prefetch = 0 : i64, scratch_operands = 0 : i64, tpu.core_type = #tpu.core_type<tc>, window_params = [{transform_indices = @transform_0, window_bounds = array<i64: 2, 16, 32>}, {pipeline_mode = #tpu.pipeline_mode<synchronous>, transform_indices = @transform_1, window_bounds = array<i64: 32, 256>}, {pipeline_mode = #tpu.pipeline_mode<synchronous>, transform_indices = @transform_2, window_bounds = array<i64: 32, 256>}, {pipeline_mode = #tpu.pipeline_mode<synchronous>, transform_indices = @transform_3, window_bounds = array<i64: 1, 256>}, {transform_indices = @transform_4, window_bounds = array<i64: 16, 256>}]} {
    %c0 = arith.constant 0 : index
    %c0_0 = arith.constant 0 : index
    %c0_1 = arith.constant 0 : index
    %0 = vector.load %arg1[%c0, %c0_0, %c0_1] : memref<2x16x32xf32, #tpu.memory_space<vmem>>, vector<1x16x32xf32>
    %1 = vector.shape_cast %0 : vector<1x16x32xf32> to vector<16x32xf32>
    %2 = arith.truncf %1 : vector<16x32xf32> to vector<16x32xbf16>
    %c1 = arith.constant 1 : index
    %c0_2 = arith.constant 0 : index
    %c0_3 = arith.constant 0 : index
    %3 = vector.load %arg1[%c1, %c0_2, %c0_3] : memref<2x16x32xf32, #tpu.memory_space<vmem>>, vector<1x16x32xf32>
    %4 = vector.shape_cast %3 : vector<1x16x32xf32> to vector<16x32xf32>
    %5 = arith.truncf %4 : vector<16x32xf32> to vector<16x32xbf16>
    %c0_4 = arith.constant 0 : index
    %c0_5 = arith.constant 0 : index
    %6 = vector.load %arg2[%c0_4, %c0_5] : memref<32x256xbf16, #tpu.memory_space<vmem>>, vector<32x256xbf16>
    %cst = arith.constant dense<0.000000e+00> : vector<16x256xf32>
    %7 = tpu.matmul %2, %6, %cst {dimension_numbers = #tpu.dot_dimension_numbers<[1], [0], [0], [1], [0, 0, 1, 1], [], []>} : vector<16x32xbf16>, vector<32x256xbf16>, vector<16x256xf32> -> vector<16x256xf32>
    %c0_6 = arith.constant 0 : index
    %c0_7 = arith.constant 0 : index
    %8 = vector.load %arg3[%c0_6, %c0_7] : memref<32x256xbf16, #tpu.memory_space<vmem>>, vector<32x256xbf16>
    %cst_8 = arith.constant dense<0.000000e+00> : vector<16x256xf32>
    %9 = tpu.matmul %5, %8, %cst_8 {dimension_numbers = #tpu.dot_dimension_numbers<[1], [0], [0], [1], [0, 0, 1, 1], [], []>} : vector<16x32xbf16>, vector<32x256xbf16>, vector<16x256xf32> -> vector<16x256xf32>
    %10 = arith.addf %7, %9 : vector<16x256xf32>
    %c0_9 = arith.constant 0 : index
    %c0_10 = arith.constant 0 : index
    %11 = vector.load %arg4[%c0_9, %c0_10] : memref<1x256xf32, #tpu.memory_space<vmem>>, vector<1x256xf32>
    %12 = vector.broadcast %11 : vector<1x256xf32> to vector<16x256xf32>
    %13 = arith.addf %10, %12 : vector<16x256xf32>
    %c0_11 = arith.constant 0 : index
    %c0_12 = arith.constant 0 : index
    %14 = vector.load %arg5[%c0_11, %c0_12] : memref<16x256xf32, #tpu.memory_space<vmem>>, vector<16x256xf32>
    tpu.vector_store %arg5[%c0_11, %c0_12], %13 {strides = array<i32>} : memref<16x256xf32, #tpu.memory_space<vmem>>, vector<16x256xf32>,
    return
  }
  func.func @transform_0(%arg0: i32) -> (i32, i32, i32) {
    %c0_i32 = arith.constant 0 : i32
    %c0_i32_0 = arith.constant 0 : i32
    %c0_i32_1 = arith.constant 0 : i32
    return %c0_i32, %arg0, %c0_i32_0 : i32, i32, i32
  }
  func.func @transform_1(%arg0: i32) -> (i32, i32) {
    %c0_i32 = arith.constant 0 : i32
    %c0_i32_0 = arith.constant 0 : i32
    %c0_i32_1 = arith.constant 0 : i32
    return %c0_i32, %c0_i32_0 : i32, i32
  }
  func.func @transform_2(%arg0: i32) -> (i32, i32) {
    %c0_i32 = arith.constant 0 : i32
    %c0_i32_0 = arith.constant 0 : i32
    %c0_i32_1 = arith.constant 0 : i32
    return %c0_i32, %c0_i32_0 : i32, i32
  }
  func.func @transform_3(%arg0: i32) -> (i32, i32) {
    %c0_i32 = arith.constant 0 : i32
    %c0_i32_0 = arith.constant 0 : i32
    %c0_i32_1 = arith.constant 0 : i32
    return %c0_i32, %c0_i32_0 : i32, i32
  }
  func.func @transform_4(%arg0: i32) -> (i32, i32) {
    %c0_i32 = arith.constant 0 : i32
    %c0_i32_0 = arith.constant 0 : i32
    return %arg0, %c0_i32 : i32, i32
  }
}

module attributes {stable_mosaic.version = 11 : i64} {
  func.func @_bilstm_kernel(%arg0: i32, %arg1: memref<8x2x128xf32, #tpu.memory_space<vmem>>, %arg2: memref<1x32x128xf32, #tpu.memory_space<vmem>>, %arg3: memref<1x8x2x32xf32, #tpu.memory_space<vmem>>) attributes {dimension_semantics = [#tpu.dimension_semantics<parallel>], iteration_bounds = array<i64: 2>, scalar_prefetch = 0 : i64, scratch_operands = 0 : i64, tpu.core_type = #tpu.core_type<tc>, window_params = [{transform_indices = @transform_0, window_bounds = array<i64: 8, 2, 128>}, {transform_indices = @transform_1, window_bounds = array<i64: 1, 32, 128>}, {transform_indices = @transform_2, window_bounds = array<i64: 1, 8, 2, 32>}]} {
    %c0 = arith.constant 0 : index
    %c0_0 = arith.constant 0 : index
    %c0_1 = arith.constant 0 : index
    %0 = vector.load %arg2[%c0, %c0_0, %c0_1] : memref<1x32x128xf32, #tpu.memory_space<vmem>>, vector<1x32x128xf32>
    %1 = vector.shape_cast %0 : vector<1x32x128xf32> to vector<32x128xf32>
    %2 = tpu.iota {dimensions = array<i32: 1>} : vector<2x128xi32>
    %c64_i32 = arith.constant 64 : i32
    %3 = vector.broadcast %c64_i32 : i32 to vector<2x128xi32>
    %4 = arith.cmpi sge, %2, %3 : vector<2x128xi32>
    %c96_i32 = arith.constant 96 : i32
    %5 = vector.broadcast %c96_i32 : i32 to vector<2x128xi32>
    %6 = arith.cmpi slt, %2, %5 : vector<2x128xi32>
    %7 = arith.andi %4, %6 : vector<2x128xi1>
    %cst = arith.constant 0.000000e+00 : f32
    %8 = vector.broadcast %cst : f32 to vector<2x32xf32>
    %cst_2 = arith.constant 0.000000e+00 : f32
    %9 = vector.broadcast %cst_2 : f32 to vector<2x32xf32>
    %c0_i32 = arith.constant 0 : i32
    %c8_i32 = arith.constant 8 : i32
    %10 = arith.addi %c0_i32, %c8_i32 : i32
    %c1_i32 = arith.constant 1 : i32
    %11:2 = scf.for %arg4 = %c0_i32 to %10 step %c1_i32 iter_args(%arg5 = %8, %arg6 = %9) -> (vector<2x32xf32>, vector<2x32xf32>)  : i32 {
      %c0_i32_4 = arith.constant 0 : i32
      %12 = arith.cmpi eq, %arg0, %c0_i32_4 : i32
      %c7_i32 = arith.constant 7 : i32
      %13 = arith.subi %c7_i32, %arg4 : i32
      %14 = arith.select %12, %arg4, %13 : i32
      %15 = arith.index_cast %14 : i32 to index
      %c0_5 = arith.constant 0 : index
      %c0_6 = arith.constant 0 : index
      %16 = vector.load %arg1[%15, %c0_5, %c0_6] : memref<8x2x128xf32, #tpu.memory_space<vmem>>, vector<1x2x128xf32>
      %17 = vector.shape_cast %16 : vector<1x2x128xf32> to vector<2x128xf32>
      %cst_7 = arith.constant dense<0.000000e+00> : vector<2x128xf32>
      %18 = tpu.matmul %arg5, %1, %cst_7 {dimension_numbers = #tpu.dot_dimension_numbers<[1], [0], [0], [1], [0, 0, 1, 1], [], []>} : vector<2x32xf32>, vector<32x128xf32>, vector<2x128xf32> -> vector<2x128xf32>
      %19 = arith.addf %17, %18 : vector<2x128xf32>
      %20 = math.tanh %19 : vector<2x128xf32>
      %21 = arith.negf %19 : vector<2x128xf32>
      %22 = math.exp %21 : vector<2x128xf32>
      %cst_8 = arith.constant 1.000000e+00 : f32
      %23 = vector.broadcast %cst_8 : f32 to vector<2x128xf32>
      %24 = arith.addf %23, %22 : vector<2x128xf32>
      %25 = arith.divf %23, %24 : vector<2x128xf32>
      %26 = arith.select %7, %20, %25 : vector<2x128xi1>, vector<2x128xf32>
      %27 = vector.extract_strided_slice %26 {offsets = [0, 0], sizes = [2, 32], strides = [1, 1]} : vector<2x128xf32> to vector<2x32xf32>
      %28 = vector.extract_strided_slice %26 {offsets = [0, 32], sizes = [2, 32], strides = [1, 1]} : vector<2x128xf32> to vector<2x32xf32>
      %29 = vector.extract_strided_slice %26 {offsets = [0, 64], sizes = [2, 32], strides = [1, 1]} : vector<2x128xf32> to vector<2x32xf32>
      %30 = vector.extract_strided_slice %26 {offsets = [0, 96], sizes = [2, 32], strides = [1, 1]} : vector<2x128xf32> to vector<2x32xf32>
      %31 = arith.mulf %28, %arg6 : vector<2x32xf32>
      %32 = arith.mulf %27, %29 : vector<2x32xf32>
      %33 = arith.addf %31, %32 : vector<2x32xf32>
      %34 = math.tanh %33 : vector<2x32xf32>
      %35 = arith.mulf %30, %34 : vector<2x32xf32>
      %c0_9 = arith.constant 0 : index
      %36 = arith.index_cast %14 : i32 to index
      %c0_10 = arith.constant 0 : index
      %c0_11 = arith.constant 0 : index
      %37 = vector.load %arg3[%c0_9, %36, %c0_10, %c0_11] : memref<1x8x2x32xf32, #tpu.memory_space<vmem>>, vector<1x1x2x32xf32>
      %38 = vector.shape_cast %37 : vector<1x1x2x32xf32> to vector<2x32xf32>
      %39 = vector.shape_cast %35 : vector<2x32xf32> to vector<1x1x2x32xf32>
      tpu.vector_store %arg3[%c0_9, %36, %c0_10, %c0_11], %39 {strides = array<i32>} : memref<1x8x2x32xf32, #tpu.memory_space<vmem>>, vector<1x1x2x32xf32>,
      scf.yield %35, %33 : vector<2x32xf32>, vector<2x32xf32>
    }
    %c8_i32_3 = arith.constant 8 : i32
    return
  }
  func.func @transform_0(%arg0: i32) -> (i32, i32, i32) {
    %c0_i32 = arith.constant 0 : i32
    %c0_i32_0 = arith.constant 0 : i32
    %c0_i32_1 = arith.constant 0 : i32
    return %c0_i32, %c0_i32_0, %arg0 : i32, i32, i32
  }
  func.func @transform_1(%arg0: i32) -> (i32, i32, i32) {
    %c0_i32 = arith.constant 0 : i32
    %c0_i32_0 = arith.constant 0 : i32
    %c0_i32_1 = arith.constant 0 : i32
    return %arg0, %c0_i32, %c0_i32_0 : i32, i32, i32
  }
  func.func @transform_2(%arg0: i32) -> (i32, i32, i32, i32) {
    %c0_i32 = arith.constant 0 : i32
    %c0_i32_0 = arith.constant 0 : i32
    %c0_i32_1 = arith.constant 0 : i32
    %c0_i32_2 = arith.constant 0 : i32
    return %arg0, %c0_i32, %c0_i32_0, %c0_i32_1 : i32, i32, i32, i32
  }
}

module attributes {stable_mosaic.version = 11 : i64} {
  func.func @_head_kernel(%arg0: i32, %arg1: memref<2x16x32xf32, #tpu.memory_space<vmem>>, %arg2: memref<32x128xbf16, #tpu.memory_space<vmem>>, %arg3: memref<32x128xbf16, #tpu.memory_space<vmem>>, %arg4: memref<1x128xf32, #tpu.memory_space<vmem>>, %arg5: memref<128x128xbf16, #tpu.memory_space<vmem>>, %arg6: memref<1x128xf32, #tpu.memory_space<vmem>>, %arg7: memref<128x128xbf16, #tpu.memory_space<vmem>>, %arg8: memref<1x128xf32, #tpu.memory_space<vmem>>, %arg9: memref<16x128xf32, #tpu.memory_space<vmem>>) attributes {dimension_semantics = [#tpu.dimension_semantics<parallel>], iteration_bounds = array<i64: 1>, scalar_prefetch = 0 : i64, scratch_operands = 0 : i64, tpu.core_type = #tpu.core_type<tc>, window_params = [{transform_indices = @transform_0, window_bounds = array<i64: 2, 16, 32>}, {pipeline_mode = #tpu.pipeline_mode<synchronous>, transform_indices = @transform_1, window_bounds = array<i64: 32, 128>}, {pipeline_mode = #tpu.pipeline_mode<synchronous>, transform_indices = @transform_2, window_bounds = array<i64: 32, 128>}, {pipeline_mode = #tpu.pipeline_mode<synchronous>, transform_indices = @transform_3, window_bounds = array<i64: 1, 128>}, {pipeline_mode = #tpu.pipeline_mode<synchronous>, transform_indices = @transform_4, window_bounds = array<i64: 128, 128>}, {pipeline_mode = #tpu.pipeline_mode<synchronous>, transform_indices = @transform_5, window_bounds = array<i64: 1, 128>}, {pipeline_mode = #tpu.pipeline_mode<synchronous>, transform_indices = @transform_6, window_bounds = array<i64: 128, 128>}, {pipeline_mode = #tpu.pipeline_mode<synchronous>, transform_indices = @transform_7, window_bounds = array<i64: 1, 128>}, {transform_indices = @transform_8, window_bounds = array<i64: 16, 128>}]} {
    %c0 = arith.constant 0 : index
    %c0_0 = arith.constant 0 : index
    %c0_1 = arith.constant 0 : index
    %0 = vector.load %arg1[%c0, %c0_0, %c0_1] : memref<2x16x32xf32, #tpu.memory_space<vmem>>, vector<1x16x32xf32>
    %1 = vector.shape_cast %0 : vector<1x16x32xf32> to vector<16x32xf32>
    %2 = arith.truncf %1 : vector<16x32xf32> to vector<16x32xbf16>
    %c1 = arith.constant 1 : index
    %c0_2 = arith.constant 0 : index
    %c0_3 = arith.constant 0 : index
    %3 = vector.load %arg1[%c1, %c0_2, %c0_3] : memref<2x16x32xf32, #tpu.memory_space<vmem>>, vector<1x16x32xf32>
    %4 = vector.shape_cast %3 : vector<1x16x32xf32> to vector<16x32xf32>
    %5 = arith.truncf %4 : vector<16x32xf32> to vector<16x32xbf16>
    %c0_4 = arith.constant 0 : index
    %c0_5 = arith.constant 0 : index
    %6 = vector.load %arg2[%c0_4, %c0_5] : memref<32x128xbf16, #tpu.memory_space<vmem>>, vector<32x128xbf16>
    %cst = arith.constant dense<0.000000e+00> : vector<16x128xf32>
    %7 = tpu.matmul %2, %6, %cst {dimension_numbers = #tpu.dot_dimension_numbers<[1], [0], [0], [1], [0, 0, 1, 1], [], []>} : vector<16x32xbf16>, vector<32x128xbf16>, vector<16x128xf32> -> vector<16x128xf32>
    %c0_6 = arith.constant 0 : index
    %c0_7 = arith.constant 0 : index
    %8 = vector.load %arg3[%c0_6, %c0_7] : memref<32x128xbf16, #tpu.memory_space<vmem>>, vector<32x128xbf16>
    %cst_8 = arith.constant dense<0.000000e+00> : vector<16x128xf32>
    %9 = tpu.matmul %5, %8, %cst_8 {dimension_numbers = #tpu.dot_dimension_numbers<[1], [0], [0], [1], [0, 0, 1, 1], [], []>} : vector<16x32xbf16>, vector<32x128xbf16>, vector<16x128xf32> -> vector<16x128xf32>
    %10 = arith.addf %7, %9 : vector<16x128xf32>
    %c0_9 = arith.constant 0 : index
    %c0_10 = arith.constant 0 : index
    %11 = vector.load %arg4[%c0_9, %c0_10] : memref<1x128xf32, #tpu.memory_space<vmem>>, vector<1x128xf32>
    %12 = vector.broadcast %11 : vector<1x128xf32> to vector<16x128xf32>
    %13 = arith.addf %10, %12 : vector<16x128xf32>
    %14 = arith.truncf %13 : vector<16x128xf32> to vector<16x128xbf16>
    %c0_11 = arith.constant 0 : index
    %c0_12 = arith.constant 0 : index
    %15 = vector.load %arg5[%c0_11, %c0_12] : memref<128x128xbf16, #tpu.memory_space<vmem>>, vector<128x128xbf16>
    %cst_13 = arith.constant dense<0.000000e+00> : vector<16x128xf32>
    %16 = tpu.matmul %14, %15, %cst_13 {dimension_numbers = #tpu.dot_dimension_numbers<[1], [0], [0], [1], [0, 0, 1, 1], [], []>} : vector<16x128xbf16>, vector<128x128xbf16>, vector<16x128xf32> -> vector<16x128xf32>
    %c0_14 = arith.constant 0 : index
    %c0_15 = arith.constant 0 : index
    %17 = vector.load %arg6[%c0_14, %c0_15] : memref<1x128xf32, #tpu.memory_space<vmem>>, vector<1x128xf32>
    %18 = vector.broadcast %17 : vector<1x128xf32> to vector<16x128xf32>
    %19 = arith.addf %16, %18 : vector<16x128xf32>
    %cst_16 = arith.constant 0.000000e+00 : f32
    %20 = vector.broadcast %cst_16 : f32 to vector<16x128xf32>
    %21 = arith.maximumf %19, %20 : vector<16x128xf32>
    %22 = arith.truncf %21 : vector<16x128xf32> to vector<16x128xbf16>
    %c0_17 = arith.constant 0 : index
    %c0_18 = arith.constant 0 : index
    %23 = vector.load %arg7[%c0_17, %c0_18] : memref<128x128xbf16, #tpu.memory_space<vmem>>, vector<128x128xbf16>
    %cst_19 = arith.constant dense<0.000000e+00> : vector<16x128xf32>
    %24 = tpu.matmul %22, %23, %cst_19 {dimension_numbers = #tpu.dot_dimension_numbers<[1], [0], [0], [1], [0, 0, 1, 1], [], []>} : vector<16x128xbf16>, vector<128x128xbf16>, vector<16x128xf32> -> vector<16x128xf32>
    %c0_20 = arith.constant 0 : index
    %c0_21 = arith.constant 0 : index
    %25 = vector.load %arg8[%c0_20, %c0_21] : memref<1x128xf32, #tpu.memory_space<vmem>>, vector<1x128xf32>
    %26 = vector.broadcast %25 : vector<1x128xf32> to vector<16x128xf32>
    %27 = arith.addf %24, %26 : vector<16x128xf32>
    %28 = arith.addf %13, %27 : vector<16x128xf32>
    %c0_22 = arith.constant 0 : index
    %c0_23 = arith.constant 0 : index
    %29 = vector.load %arg9[%c0_22, %c0_23] : memref<16x128xf32, #tpu.memory_space<vmem>>, vector<16x128xf32>
    tpu.vector_store %arg9[%c0_22, %c0_23], %28 {strides = array<i32>} : memref<16x128xf32, #tpu.memory_space<vmem>>, vector<16x128xf32>,
    return
  }
  func.func @transform_0(%arg0: i32) -> (i32, i32, i32) {
    %c0_i32 = arith.constant 0 : i32
    %c0_i32_0 = arith.constant 0 : i32
    %c0_i32_1 = arith.constant 0 : i32
    return %c0_i32, %arg0, %c0_i32_0 : i32, i32, i32
  }
  func.func @transform_1(%arg0: i32) -> (i32, i32) {
    %c0_i32 = arith.constant 0 : i32
    %c0_i32_0 = arith.constant 0 : i32
    %c0_i32_1 = arith.constant 0 : i32
    return %c0_i32, %c0_i32_0 : i32, i32
  }
  func.func @transform_2(%arg0: i32) -> (i32, i32) {
    %c0_i32 = arith.constant 0 : i32
    %c0_i32_0 = arith.constant 0 : i32
    %c0_i32_1 = arith.constant 0 : i32
    return %c0_i32, %c0_i32_0 : i32, i32
  }
  func.func @transform_3(%arg0: i32) -> (i32, i32) {
    %c0_i32 = arith.constant 0 : i32
    %c0_i32_0 = arith.constant 0 : i32
    %c0_i32_1 = arith.constant 0 : i32
    return %c0_i32, %c0_i32_0 : i32, i32
  }
  func.func @transform_4(%arg0: i32) -> (i32, i32) {
    %c0_i32 = arith.constant 0 : i32
    %c0_i32_0 = arith.constant 0 : i32
    %c0_i32_1 = arith.constant 0 : i32
    return %c0_i32, %c0_i32_0 : i32, i32
  }
  func.func @transform_5(%arg0: i32) -> (i32, i32) {
    %c0_i32 = arith.constant 0 : i32
    %c0_i32_0 = arith.constant 0 : i32
    %c0_i32_1 = arith.constant 0 : i32
    return %c0_i32, %c0_i32_0 : i32, i32
  }
  func.func @transform_6(%arg0: i32) -> (i32, i32) {
    %c0_i32 = arith.constant 0 : i32
    %c0_i32_0 = arith.constant 0 : i32
    %c0_i32_1 = arith.constant 0 : i32
    return %c0_i32, %c0_i32_0 : i32, i32
  }
  func.func @transform_7(%arg0: i32) -> (i32, i32) {
    %c0_i32 = arith.constant 0 : i32
    %c0_i32_0 = arith.constant 0 : i32
    %c0_i32_1 = arith.constant 0 : i32
    return %c0_i32, %c0_i32_0 : i32, i32
  }
  func.func @transform_8(%arg0: i32) -> (i32, i32) {
    %c0_i32 = arith.constant 0 : i32
    %c0_i32_0 = arith.constant 0 : i32
    return %arg0, %c0_i32 : i32, i32
  }
}

</mosaic_0001>

<bundles_post_ra>
// kernel: blstm_res_conversion_forward.5
= control target key start
LH: loop header
LB: loop body
LE: loop exit
PB: predicated region body
PF: predicated region fallthrough
CT: control target
= control target key end

     0   :  { %v121_v1 = vmov 0   ;;  %vm54_vm0 = vcmask 261120   ;;  %v24_v8 = vlaneseq  ;;  %s175_s1 = inlined_call_operand.vmem [shape: bf16[32,256], index: 1, kind: input, shape index: {}]   ;;  %s176_s0 = inlined_call_operand.vmem [shape: f32[16,32], index: 0, kind: input, shape index: {}]   ;;  %s177_s2 = inlined_call_operand.vmem [shape: f32[1,256], index: 2, kind: input, shape index: {}]   ;;  %s178_s3 = inlined_call_operand.vmem [shape: f32[16,256], index: 3, kind: output, shape index: {}]  }
   0x1   :  { %v115_v0 = vld [vmem:[%s175_s1 + $0x4] ss:$8 sps:$4 sm:$0xff]   ;;  %90 = vmatprep.mubr.bf16.mxu0 %v121_v1  ;;  %v117_v2 = vld [vmem:[%s175_s1] ss:$8 sps:$4 sm:$0xff]   ;;  %v118_v3 = vld [vmem:[%s175_s1 + $0x14] ss:$8 sps:$4 sm:$0xff]  }
   0x2   :  { %58 = vmatprep.subr.bf16.mxu0 %v115_v0  ;;  %v120_v4 = vld [vmem:[%s175_s1 + $0x10] ss:$8 sps:$4 sm:$0xff]   ;;  %v15_v5 = vld [vmem:[%s176_s0] sm:$0xff]  ;;  %v16_v6 = vld [vmem:[%s176_s0 + $0x8] sm:$0xff]  ;;  %v25_v9 = vshrl.u32 %v24_v8, 7 }
   0x3   :  { %59 = vmatpush1.bf16.msra.mxu0 %v117_v2  ;;  %v17_v7 = vpack.c.bf16 %v16_v6, %v15_v5  ;;  %v22_v11 = vld [vmem:[%s177_s2] sm:$0x3] }
   0x4   :  { %60 = vmatprep.subr.bf16.mxu0 %v118_v3  ;;  %v26_v10 = vsub.s32 0, %v25_v9  ;;  %v30_v12 = vsub.s32 1, %v25_v9 }
   0x6   :  { %v27_v13 = vrot.slane %v22_v11, %v26_v10  ;;  %v31_v14 = vrot.slane %v22_v11, %v30_v12 }
   0x7   :  { %61 = vmatpush1.bf16.msra.mxu0 %v120_v4 }
   0xa   :  { %113 = vmatmul.mubr.msk.bf16.vlgmr.msra.gmra.mrb[0].mxu0 %vm54_vm0, %v17_v7 }
  0xdd   :  { %v92_v15 = vpop.f32.mrb[0].mxu0 }
  0xde   :  { %v93_v16 = vadd.f32 %v92_v15, %v27_v13  ;;  %v94_v17 = vpop.f32.mrb[1].mxu0 }
  0xdf   :  { %v95_v18 = vadd.f32 %v94_v17, %v31_v14  ;;  %v96_v19 = vpop.f32.mrb[2].mxu0 }
  0xe0   :  { %101 = vst [vmem:[%s178_s3] sm:$0xff] %v93_v16  ;;  %v97_v20 = vadd.f32 %v96_v19, %v27_v13  ;;  %v98_v21 = vpop.f32.mrb[3].mxu0 }
  0xe1   :  { %102 = vst [vmem:[%s178_s3 + $0x8] sm:$0xff] %v95_v18  ;;  %v99_v22 = vadd.f32 %v98_v21, %v31_v14 }
  0xe2   :  { %103 = vst [vmem:[%s178_s3 + $0x10] sm:$0xff] %v97_v20 }
  0xe3   :  { %104 = vst [vmem:[%s178_s3 + $0x18] sm:$0xff] %v99_v22 }

// kernel: blstm_res_conversion_forward.7
= control target key start
LH: loop header
LB: loop body
LE: loop exit
PB: predicated region body
PF: predicated region fallthrough
CT: control target
= control target key end

     0   :  { %v219_v1 = vmov 0   ;;  %vm53_vm0 = vcmask 261120   ;;  %v168_v15 = vlaneseq  ;;  %s296_s2 = inlined_call_operand.vmem [shape: bf16[32,256], index: 2, kind: input, shape index: {}]   ;;  %s297_s1 = inlined_call_operand.vmem [shape: bf16[32,256], index: 1, kind: input, shape index: {}]   ;;  %s298_s0 = inlined_call_operand.vmem [shape: f32[2,16,32], index: 0, kind: input, shape index: {}]   ;;  %s299_s3 = inlined_call_operand.vmem [shape: f32[1,256], index: 3, kind: input, shape index: {}]   ;;  %s300_s4 = inlined_call_operand.vmem [shape: f32[16,256], index: 4, kind: output, shape index: {}]  }
   0x1   :  { %v207_v0 = vld [vmem:[%s296_s2 + $0x4] ss:$8 sps:$4 sm:$0xff]   ;;  %89 = vmatprep.mubr.bf16.mxu1 %v219_v1  ;;  %155 = vmatprep.mubr.bf16.mxu0 %v219_v1  ;;  %v211_v3 = vld [vmem:[%s296_s2] ss:$8 sps:$4 sm:$0xff]   ;;  %v213_v5 = vld [vmem:[%s296_s2 + $0x14] ss:$8 sps:$4 sm:$0xff]  }
   0x2   :  { %v209_v2 = vld [vmem:[%s297_s1 + $0x4] ss:$8 sps:$4 sm:$0xff]   ;;  %57 = vmatprep.subr.bf16.mxu1 %v207_v0  ;;  %v212_v4 = vld [vmem:[%s297_s1] ss:$8 sps:$4 sm:$0xff]   ;;  %v215_v6 = vld [vmem:[%s297_s1 + $0x14] ss:$8 sps:$4 sm:$0xff]  }
   0x3   :  { %123 = vmatprep.subr.bf16.mxu0 %v209_v2  ;;  %58 = vmatpush1.bf16.msra.mxu1 %v211_v3  ;;  %v217_v7 = vld [vmem:[%s296_s2 + $0x10] ss:$8 sps:$4 sm:$0xff]   ;;  %v18_v11 = vld [vmem:[%s298_s0] sm:$0xff]  ;;  %v19_v12 = vld [vmem:[%s298_s0 + $0x8] sm:$0xff]  ;;  %v169_v16 = vshrl.u32 %v168_v15, 7 }
   0x4   :  { %124 = vmatpush1.bf16.msra.mxu0 %v212_v4  ;;  %59 = vmatprep.subr.bf16.mxu1 %v213_v5  ;;  %v218_v8 = vld [vmem:[%s297_s1 + $0x10] ss:$8 sps:$4 sm:$0xff]   ;;  %v20_v14 = vpack.c.bf16 %v19_v12, %v18_v11  ;;  %v166_v18 = vld [vmem:[%s299_s3] sm:$0x3] }
   0x5   :  { %v190_v9 = vld [vmem:[%s298_s0 + $0x10] sm:$0xff]  ;;  %v191_v10 = vld [vmem:[%s298_s0 + $0x18] sm:$0xff]  ;;  %125 = vmatprep.subr.bf16.mxu0 %v215_v6  ;;  %v170_v17 = vsub.s32 0, %v169_v16  ;;  %v174_v19 = vsub.s32 1, %v169_v16 }
   0x6   :  { %v24_v13 = vpack.c.bf16 %v191_v10, %v190_v9 }
   0x7   :  { %60 = vmatpush1.bf16.msra.mxu1 %v217_v7  ;;  %v171_v20 = vrot.slane %v166_v18, %v170_v17  ;;  %v175_v23 = vrot.slane %v166_v18, %v174_v19 }
   0x8   :  { %126 = vmatpush1.bf16.msra.mxu0 %v218_v8 }
   0xa   :  { %196 = vmatmul.mubr.msk.bf16.vlgmr.msra.gmra.mrb[0].mxu1 %vm53_vm0, %v24_v13 }
   0xb   :  { %201 = vmatmul.mubr.msk.bf16.vlgmr.msra.gmra.mrb[0].mxu0 %vm53_vm0, %v20_v14 }
  0xdd   :  { %v91_v21 = vpop.f32.mrb[0].mxu1 }
  0xde   :  { %v157_v22 = vpop.f32.mrb[0].mxu0  ;;  %v93_v25 = vpop.f32.mrb[1].mxu1 }
  0xdf   :  { %v158_v24 = vadd.f32 %v157_v22, %v91_v21  ;;  %v159_v26 = vpop.f32.mrb[1].mxu0  ;;  %v95_v28 = vpop.f32.mrb[2].mxu1 }
  0xe0   :  { %v160_v27 = vadd.f32 %v159_v26, %v93_v25  ;;  %v161_v29 = vpop.f32.mrb[2].mxu0  ;;  %v97_v32 = vpop.f32.mrb[3].mxu1 }
  0xe1   :  { %v178_v30 = vadd.f32 %v171_v20, %v158_v24  ;;  %v162_v31 = vadd.f32 %v161_v29, %v95_v28  ;;  %v163_v33 = vpop.f32.mrb[3].mxu0 }
  0xe2   :  { %v179_v34 = vadd.f32 %v175_v23, %v160_v27  ;;  %v164_v35 = vadd.f32 %v163_v33, %v97_v32 }
  0xe3   :  { %182 = vst [vmem:[%s300_s4] sm:$0xff] %v178_v30  ;;  %v180_v36 = vadd.f32 %v171_v20, %v162_v31 }
  0xe4   :  { %183 = vst [vmem:[%s300_s4 + $0x8] sm:$0xff] %v179_v34  ;;  %v181_v37 = vadd.f32 %v175_v23, %v164_v35 }
  0xe5   :  { %184 = vst [vmem:[%s300_s4 + $0x10] sm:$0xff] %v180_v36 }
  0xe6   :  { %185 = vst [vmem:[%s300_s4 + $0x18] sm:$0xff] %v181_v37 }

// kernel: blstm_res_conversion_forward.6
= control target key start
LH: loop header
LB: loop body
LE: loop exit
PB: predicated region body
PF: predicated region fallthrough
CT: control target
= control target key end

     0   :  { %s623_s9 = smov 0   ;;  %s625_s10 = smov 0   ;;  %s737_s0 = inlined_call_operand.vmem [shape: f32[8,2,256], index: 0, kind: input, shape index: {}]   ;;  %s738_s1 = inlined_call_operand.vmem [shape: f32[2,32,128], index: 1, kind: input, shape index: {}]   ;;  %s739_s2 = inlined_call_operand.vmem [shape: f32[2,8,2,32], index: 2, kind: output, shape index: {}]  }
   0x1   :  { %s627_s11 = smov 0  }
   0x2 LB: > { %s639_s12 = sadd.s32 4294967295, %s589_s11   ;;  %s642_s13 = sadd.s32 1, %s589_s11   ;;  %s589_s11 = sphi %s627_s11, %s744_s11   ;;  %s585_s10 = sphi %s625_s10, %s743_s10   ;;  %s581_s9 = sphi %s623_s9, %s742_s9  }
   0x3   : > { %s16_s14 = ssub.s32 %s589_s11, %s642_s13  ;;  %s19_s15 = sadd.s32 1, %s585_s10 }
   0x4   : > { %p17_p0 = scmp.eq.s32.totalorder %s16_s14, 0  ;;  %p26_p1 = scmp.ne.s32.totalorder %s585_s10, %s581_s9 }
   0x5   : > { %p27_p2 = scmp.eq.s32.totalorder %s589_s11, 0  ;;  %p456_p4 = scmp.ge.s32.totalorder %s589_s11, 2 }
   0x6   : > { %s651_s16 = scalar_select %p17_p0, %s585_s10, %s19_s15  }
   0x7   : > { %p28_p3 = por %p27_p2, %p26_p1  ;;  %104 = sbr.rel (%p456_p4) target bundleno = 23 (0x17), region = 16 }
   0xe   : > { %107 = sbr.rel (!%p28_p3) target bundleno = 23 (0x17), region = 20  ;;  %s109_s17 = sand.u32 (%p28_p3), 1, %s585_s10  }
   0xf   : > { %s458_s18 = sshll.u32 (%p28_p3), %s589_s11, 1  ;;  %s457_s19 = sshll.u32 (%p28_p3), %s109_s17, 4 }
  0x10   : > { %s113_s22 = scalar_lea.vmem (%p28_p3), %s737_s0, %s458_s18  ;;  %s111_s23 = scalar_lea.vmem (%p28_p3), [#allocation2], %s457_s19 }
  0x11   : > { %v129_v0 = vld [vmem:[%s113_s22] sm:$0x3] (%p28_p3)  ;;  %v131_v1 = vld [vmem:[%s113_s22 + $0x4] sm:$0x3] (%p28_p3)  ;;  %v133_v2 = vld [vmem:[%s113_s22 + $0x8] sm:$0x3] (%p28_p3) }
  0x12   : > { %130 = vst [vmem:[%s111_s23] sm:$0x3] (%p28_p3), %v129_v0  ;;  %132 = vst [vmem:[%s111_s23 + $0x2] sm:$0x3] (%p28_p3), %v131_v1  ;;  %v135_v3 = vld [vmem:[%s113_s22 + $0xc] sm:$0x3] (%p28_p3) }
  0x13   : > { %v137_v4 = vld [vmem:[%s113_s22 + $0x10] sm:$0x3] (%p28_p3)  ;;  %134 = vst [vmem:[%s111_s23 + $0x4] sm:$0x3] (%p28_p3), %v133_v2  ;;  %136 = vst [vmem:[%s111_s23 + $0x6] sm:$0x3] (%p28_p3), %v135_v3 }
  0x14   : > { %138 = vst [vmem:[%s111_s23 + $0x8] sm:$0x3] (%p28_p3), %v137_v4  ;;  %v139_v5 = vld [vmem:[%s113_s22 + $0x14] sm:$0x3] (%p28_p3)  ;;  %v141_v6 = vld [vmem:[%s113_s22 + $0x18] sm:$0x3] (%p28_p3) }
  0x15   : > { %v143_v7 = vld [vmem:[%s113_s22 + $0x1c] sm:$0x3]  ;;  %140 = vst [vmem:[%s111_s23 + $0xa] sm:$0x3] %v139_v5  ;;  %142 = vst [vmem:[%s111_s23 + $0xc] sm:$0x3] %v141_v6 }
  0x16   : > { %144 = vst [vmem:[%s111_s23 + $0xe] sm:$0x3] %v143_v7 }
  0x17 PF: > { %p459_p5 = scmp.ge.s32.totalorder %s589_s11, 1  ;;  %p190_p6 = scmp.lt.s32.totalorder %s589_s11, 3 }
  0x19   : > { %p191_p7 = pnand %p459_p5, %p190_p6 }
  0x1a   : > { %s197_s24 = sand.u32 (!%p191_p7), 1, %s581_s9   ;;  %p223_p8 = scmp.lt.s32.totalorder (!%p191_p7), %s639_s12, 1  ;;  %v237_v8 = vlaneseq (!%p191_p7)  ;;  %v687_v15 = vmov (!%p191_p7), 0.0   ;;  %v689_v16 = vmov (!%p191_p7), 0.0  }
  0x1b   : > { %194 = sbr.rel (%p191_p7) target bundleno = 875 (0x36b), region = 65  ;;  %s663_s25 = sshll.u32 (!%p191_p7), %s197_s24, 4 }
  0x1c   : > { %v238_v9 = vand.u32 (!%p191_p7), 127, %v237_v8  ;;  %s199_s7 = scalar_lea.vmem (!%p191_p7), [#allocation2], %s663_s25  ;;  %s691_s8 = smov (!%p191_p7), 0  }
  0x1e   : > { %vm239_vm0 = vcmp.ge.s32.totalorder (!%p191_p7), %v238_v9, 64  ;;  %vm240_vm1 = vcmp.lt.s32.totalorder (!%p191_p7), %v238_v9, 96 }
  0x1f   : > { %vm666_vm2 = vmand (!%p191_p7), %vm239_vm0, %vm240_vm1 }
  0x22   : > { %s224_s26 = scalar_select %p223_p8, %s639_s12, 1 }
  0x24   : > { %s470_s27 = sshll.u32 %s224_s26, 5  ;;  %s471_s28 = sshll.u32 %s224_s26, 4 }
  0x25   : > { %s227_s3 = scalar_lea.vmem %s738_s1, %s470_s27  ;;  %s676_s6 = scalar_lea.vmem %s739_s2, %s471_s28 }
  0x26   : > { %v678_v11 = vld [vmem:[%s227_s3] sm:$0xff]  ;;  %v680_v12 = vld [vmem:[%s227_s3 + $0x8] sm:$0xff]  ;;  %v682_v13 = vld [vmem:[%s227_s3 + $0x10] sm:$0xff] }
  0x27   : > { %v684_v14 = vld [vmem:[%s227_s3 + $0x18] sm:$0xff] }
  0x28 LB: >> { %v489_v17 = vpack.c.bf16 %v680_v12, %v678_v11  ;;  %v603_v18 = vmov 0.0|0.0   ;;  %s604_s9 = smov 32   ;;  %v492_v19 = vpack.c.bf16 %v684_v14, %v682_v13  ;;  %vm605_vm3 = vmmov 0   ;;  %p250_p9 = scmp.eq.s32.totalorder %s639_s12, 0  ;;  %s601_s8 = sphi %s691_s8, %s247_s8   ;;  %v597_v16 = vphi %v689_v16, %v357_v16   ;;  %v593_v15 = vphi %v687_v15, %v351_v15  }
  0x29   : >> { %488 = vmatprep.subr.bf16.mxu0 %v603_v18  ;;  %257 = vrot.lane.b32.xlu0 %v597_v16, %s604_s9  ;;  %v606_v20 = vmov 0.0   ;;  %vm259_vm4 = vcmask 261120   ;;  %s251_s11 = ssub.s32 7, %s601_s8  ;;  %s607_s18 = smov 64   ;;  %vm363_vm5 = vcmask 254976  }
  0x2a   : >> { %490 = vmatpush3.bf16.msra.mxu0 %v489_v17  ;;  %485 = vmatprep.mubr.msk.f32.mxu0 %vm605_vm3, %v606_v20  ;;  %s706_s14 = scalar_select %p250_p9, %s601_s8, %s251_s11 }
  0x2b   : >> { %491 = vmatprep.subr.bf16.mxu0 %v603_v18  ;;  %s247_s8 = sadd.s32 1, %s601_s8  }
  0x2c   : >> { %s465_s15 = sshll.u32 %s706_s14, 1  ;;  %p244_p10 = scmp.ge.s32.totalorder %s247_s8, 8  }
  0x2d   : >> { %s254_s17 = scalar_lea.vmem %s199_s7, %s465_s15 [#allocation2]  ;;  %s362_s19 = scalar_lea.vmem %s676_s6, %s465_s15 }
  0x2e   : >> { %493 = vmatpush3.bf16.msra.mxu0 %v492_v19  ;;  %v255_v22 = vld [vmem:[%s254_s17] sm:$0x3] }
  0x9b   : >> { %v258_v21 = vpop.permute.xlu0 %257 }
  0x9c   : >> { %486 = vmatmul.mubr.msk.f32.vlgmr.msra.gmra.mrb[0].mxu0 %vm259_vm4, %v258_v21 }
 0x16f   : >> { %v328_v23 = vpop.f32.mrb[0].mxu0 }
 0x170   : >> { %v332_v24 = vadd.f32 %v328_v23, %v255_v22  ;;  %v487_v25 = vpop.f32.mrb[1].mxu0 }
 0x172   : >> { %v467_v26 = vmul.f32 -1.442695, %v332_v24 }
 0x174   : >> { %547 = vpow2.f32 %v467_v26 }
 0x175   : >> { %549 = vtanh.f32 %v332_v24 }
 0x17e   : >> { %v548_v27 = vpop.eup %547 }
 0x17f   : >> { %v337_v28 = vadd.f32 1.0, %v548_v27  ;;  %v550_v29 = vpop.eup %549 }
 0x181   : >> { %551 = vrcp.f32 %v337_v28 }
 0x18b   : >> { %v552_v30 = vpop.eup %551 }
 0x18c   : >> { %v340_v31 = vsel %vm666_vm2, %v550_v29, %v552_v30 }
 0x18d   : >> { %343 = vrot.lane.b32.xlu0 %v340_v31, %s607_s18  ;;  %v341_v34 = vmul.f32 %v593_v15, %v340_v31 }
 0x1ff   : >> { %v344_v32 = vpop.permute.xlu0 %343 }
 0x200   : >> { %v346_v33 = vmul.f32 %v344_v32, %v340_v31 }
 0x202   : >> { %348 = vrot.lane.b32.xlu1 %v346_v33, %s604_s9 }
 0x274   : >> { %v349_v35 = vpop.permute.xlu1 %348 }
 0x275   : >> { %v351_v15 = vadd.f32 %v349_v35, %v341_v34  }
 0x277   : >> { %553 = vtanh.f32 %v351_v15 }
 0x281   : >> { %v554_v36 = vpop.eup %553 }
 0x282   : >> { %354 = vrot.lane.b32.xlu1 %v554_v36, %s607_s18 }
 0x2f4   : >> { %v355_v37 = vpop.permute.xlu1 %354 }
 0x2f5   : >> { %v357_v16 = vmul.f32 %v355_v37, %v340_v31  }
 0x2f7   : >> { %359 = vrot.lane.b32.xlu0 %v357_v16, %s604_s9 }
 0x364   : > { %246 = sbr.rel (!%p244_p10) target bundleno = 40 (0x28), region = 116 }
 0x369   : >> { %v360_v38 = vpop.permute.xlu0 %359 }
 0x36a   : >> { %364 = vst.msk [vmem:[%s362_s19] sm:$0x3] %vm363_vm5, %v360_v38 }
 0x36b PF: > { %p9_p11 = scmp.ge.s32.totalorder %s642_s13, 4   ;;  %s742_s9 = smov %s585_s10 }
 0x36c   : > { %s743_s10 = smov %s651_s16  ;;  %s744_s11 = smov %s642_s13 }
 0x36d   :  { %11 = sbr.rel (!%p9_p11) target bundleno = 2 (0x2), region = 127 }

// kernel: blstm_res_conversion_forward.9
= control target key start
LH: loop header
LB: loop body
LE: loop exit
PB: predicated region body
PF: predicated region fallthrough
CT: control target
= control target key end

     0   :  { %v572_v1 = vmov 0.0   ;;  %vm573_vm0 = vmmov 0   ;;  %vm58_vm1 = vcmask 261120   ;;  %s743_s0 = inlined_call_operand.vmem [shape: f32[2,16,32], index: 0, kind: input, shape index: {}]   ;;  %s744_s1 = inlined_call_operand.vmem [shape: bf16[32,128], index: 1, kind: input, shape index: {}]   ;;  %s745_s2 = inlined_call_operand.vmem [shape: bf16[32,128], index: 2, kind: input, shape index: {}]   ;;  %s746_s3 = inlined_call_operand.vmem [shape: f32[1,128], index: 3, kind: input, shape index: {}]   ;;  %s747_s4 = inlined_call_operand.vmem [shape: bf16[128,128], index: 4, kind: input, shape index: {}]   ;;  %s748_s5 = inlined_call_operand.vmem [shape: f32[1,128], index: 5, kind: input, shape index: {}]   ;;  %s749_s6 = inlined_call_operand.vmem [shape: bf16[128,128], index: 6, kind: input, shape index: {}]   ;;  %s750_s7 = inlined_call_operand.vmem [shape: f32[1,128], index: 7, kind: input, shape index: {}]   ;;  %s751_s8 = inlined_call_operand.hbm [shape: f32[16,128], index: 8, kind: output, shape index: {}]  }
   0x1   :  { %v528_v0 = vld [vmem:[%s745_s2] sm:$0xff]   ;;  %467 = vmatprep.subr.bf16.mxu0 %v572_v1  ;;  %475 = vmatprep.subr.bf16.mxu1 %v572_v1  ;;  %v530_v3 = vld [vmem:[%s745_s2 + $0x8] sm:$0xff]   ;;  %v416_v5 = vld [vmem:[%s743_s0 + $0x10] sm:$0xff] }
   0x2   :  { %v529_v2 = vld [vmem:[%s744_s1] sm:$0xff]   ;;  %468 = vmatpush3.bf16.msra.mxu0 %v528_v0  ;;  %471 = vmatprep.mubr.msk.bf16.mxu0 %vm573_vm0, %v572_v1  ;;  %v531_v4 = vld [vmem:[%s744_s1 + $0x8] sm:$0xff]   ;;  %v417_v6 = vld [vmem:[%s743_s0 + $0x18] sm:$0xff] }
   0x3   :  { %476 = vmatpush3.bf16.msra.mxu1 %v529_v2  ;;  %469 = vmatprep.subr.bf16.mxu0 %v572_v1  ;;  %v31_v7 = vld [vmem:[%s743_s0] sm:$0xff]  ;;  %v37_v8 = vpack.c.bf16 %v417_v6, %v416_v5  ;;  %v32_v9 = vld [vmem:[%s743_s0 + $0x8] sm:$0xff]  ;;  %v534_v13 = vld [vmem:[%s747_s4 + $0x10] sm:$0xff]  }
   0x4   :  { %477 = vmatprep.subr.bf16.mxu1 %v572_v1  ;;  %479 = vmatprep.mubr.msk.bf16.mxu1 %vm573_vm0, %v572_v1  ;;  %v33_v10 = vpack.c.bf16 %v32_v9, %v31_v7  ;;  %v532_v11 = vld [vmem:[%s747_s4] sm:$0xff]   ;;  %v533_v12 = vld [vmem:[%s747_s4 + $0x8] sm:$0xff]   ;;  %v535_v14 = vld [vmem:[%s747_s4 + $0x18] sm:$0xff]  }
   0x6   :  { %470 = vmatpush3.bf16.msra.mxu0 %v530_v3 }
   0x7   :  { %478 = vmatpush3.bf16.msra.mxu1 %v531_v4  ;;  %483 = vmatprep.subr.bf16.mxu0 %v572_v1 }
   0x8   :  { %503 = vmatprep.subr.bf16.mxu1 %v572_v1 }
   0x9   :  { %472 = vmatmul.mubr.msk.bf16.vlgmr.msra.gmra.mrb[0].mxu0 %vm58_vm1, %v37_v8 }
   0xa   :  { %480 = vmatmul.mubr.msk.bf16.vlgmr.msra.gmra.mrb[0].mxu1 %vm58_vm1, %v33_v10  ;;  %484 = vmatpush3.bf16.msra.mxu0 %v532_v11 }
   0xb   :  { %485 = vmatprep.subr.bf16.mxu0 %v572_v1  ;;  %499 = vmatprep.mubr.msk.bf16.mxu0 %vm573_vm0, %v572_v1 }
   0xc   :  { %519 = vmatprep.mubr.msk.bf16.mxu1 %vm573_vm0, %v572_v1 }
   0xe   :  { %486 = vmatpush3.bf16.msra.mxu0 %v533_v12 }
   0xf   :  { %487 = vmatprep.subr.bf16.mxu0 %v572_v1 }
  0x12   :  { %488 = vmatpush3.bf16.msra.mxu0 %v534_v13 }
  0x13   :  { %13 = vsyncpa [#allocation3], 0  ;;  %489 = vmatprep.subr.bf16.mxu0 %v572_v1  ;;  %v536_v15 = vld [vmem:[%s747_s4 + $0x20] sm:$0xff]   ;;  %v537_v16 = vld [vmem:[%s747_s4 + $0x28] sm:$0xff]  }
  0x14   :  { %v538_v17 = vld [vmem:[%s747_s4 + $0x30] sm:$0xff]   ;;  %v539_v18 = vld [vmem:[%s747_s4 + $0x38] sm:$0xff]   ;;  %v540_v19 = vld [vmem:[%s749_s6] sm:$0xff]  }
  0x15   :  { %504 = vmatpush3.bf16.msra.mxu1 %v540_v19  ;;  %v541_v20 = vld [vmem:[%s749_s6 + $0x8] sm:$0xff]   ;;  %v542_v21 = vld [vmem:[%s749_s6 + $0x10] sm:$0xff]   ;;  %v543_v22 = vld [vmem:[%s749_s6 + $0x18] sm:$0xff]  }
  0x16   :  { %490 = vmatpush3.bf16.msra.mxu0 %v535_v14  ;;  %505 = vmatprep.subr.bf16.mxu1 %v572_v1  ;;  %v544_v23 = vld [vmem:[%s749_s6 + $0x20] sm:$0xff]   ;;  %v545_v24 = vld [vmem:[%s749_s6 + $0x28] sm:$0xff]   ;;  %v546_v39 = vld [vmem:[%s749_s6 + $0x30] sm:$0xff]  }
  0x17   :  { %491 = vmatprep.subr.bf16.mxu0 %v572_v1  ;;  %v424_v31 = vld [vmem:[%s746_s3] ss:$0 sm:$0xff]  ;;  %v547_v40 = vld [vmem:[%s749_s6 + $0x38] sm:$0xff]   ;;  %s574_s6 = smov [#allocation2]  }
  0x18   :  { %v425_v41 = vld [vmem:[%s748_s5] ss:$0 sm:$0xff]  ;;  %s405_s29 = sshll.u32 %s574_s6, 4  ;;  %s406_s29 = int_to_ptr.vmem [resolvable:$true] %s405_s29 }
  0x19   :  { %506 = vmatpush3.bf16.msra.mxu1 %v541_v20  ;;  %v434_v51 = vld [vmem:[%s750_s7] ss:$0 sm:$0xff]  ;;  %s548_s5 = scalar_lea.vmem %s406_s29, 256  ;;  %p553_p1 = scmp.lt.s32.totalorder %s406_s29, %s406_s29 }
  0x1a   :  { %492 = vmatpush3.bf16.msra.mxu0 %v536_v15  ;;  %507 = vmatprep.subr.bf16.mxu1 %v572_v1  ;;  %p549_p0 = scmp.ne.s32.totalorder %s406_s29, %s548_s5  ;;  %p554_p2 = scmp.lt.s32.totalorder %s548_s5, %s548_s5 }
  0x1b   :  { %493 = vmatprep.subr.bf16.mxu0 %v572_v1 }
  0x1c   :  { %p555_p3 = por %p554_p2, %p553_p1 }
  0x1d   :  { %508 = vmatpush3.bf16.msra.mxu1 %v542_v21 }
  0x1e   :  { %494 = vmatpush3.bf16.msra.mxu0 %v537_v16  ;;  %509 = vmatprep.subr.bf16.mxu1 %v572_v1  ;;  %p556_p4 = pnand %p555_p3, %p549_p0 }
  0x1f   :  { %495 = vmatprep.subr.bf16.mxu0 %v572_v1 }
  0x21   :  { %510 = vmatpush3.bf16.msra.mxu1 %v543_v22 }
  0x22   :  { %496 = vmatpush3.bf16.msra.mxu0 %v538_v17  ;;  %511 = vmatprep.subr.bf16.mxu1 %v572_v1 }
  0x23   :  { %497 = vmatprep.subr.bf16.mxu0 %v572_v1 }
  0x25   :  { %512 = vmatpush3.bf16.msra.mxu1 %v544_v23 }
  0x26   :  { %498 = vmatpush3.bf16.msra.mxu0 %v539_v18  ;;  %513 = vmatprep.subr.bf16.mxu1 %v572_v1 }
  0x29   :  { %514 = vmatpush3.bf16.msra.mxu1 %v545_v24 }
  0x2a   :  { %515 = vmatprep.subr.bf16.mxu1 %v572_v1 }
  0x2d   :  { %516 = vmatpush3.bf16.msra.mxu1 %v546_v39 }
  0x2e   :  { %517 = vmatprep.subr.bf16.mxu1 %v572_v1 }
  0x31   :  { %518 = vmatpush3.bf16.msra.mxu1 %v547_v40 }
  0xdc   :  { %v96_v25 = vpop.f32.mrb[0].mxu0 }
  0xdd   :  { %v152_v26 = vpop.f32.mrb[0].mxu1  ;;  %v473_v27 = vpop.f32.mrb[1].mxu0 }
  0xde   :  { %v153_v28 = vadd.f32 %v152_v26, %v96_v25  ;;  %v481_v29 = vpop.f32.mrb[1].mxu1  ;;  %v99_v30 = vpop.f32.mrb[2].mxu0 }
  0xdf   :  { %v155_v32 = vpop.f32.mrb[2].mxu1  ;;  %v474_v33 = vpop.f32.mrb[3].mxu0 }
  0xe0   :  { %v156_v34 = vadd.f32 %v155_v32, %v99_v30  ;;  %v482_v35 = vpop.f32.mrb[3].mxu1  ;;  %v166_v36 = vadd.f32 %v424_v31, %v153_v28 }
  0xe2   :  { %v167_v37 = vadd.f32 %v424_v31, %v156_v34 }
  0xe4   :  { %v168_v38 = vpack.c.bf16 %v167_v37, %v166_v36 }
  0xe6   :  { %500 = vmatmul.mubr.bf16.vlgmr.msra.gmra.mrb[4].mxu0 %v168_v38 }
 0x1b9   :  { %v274_v42 = vpop.f32.mrb[4].mxu0 }
 0x1ba   :  { %v275_v43 = vadd.f32 %v425_v41, %v274_v42  ;;  %v501_v44 = vpop.f32.mrb[5].mxu0 }
 0x1bb   :  { %v277_v45 = vpop.f32.mrb[6].mxu0 }
 0x1bc   :  { %v278_v46 = vadd.f32 %v425_v41, %v277_v45  ;;  %v502_v47 = vpop.f32.mrb[7].mxu0  ;;  %v281_v48 = vmax.f32 %v275_v43, 0.0 }
 0x1be   :  { %v282_v49 = vmax.f32 %v278_v46, 0.0 }
 0x1c0   :  { %v283_v50 = vpack.c.bf16 %v282_v49, %v281_v48 }
 0x1c2   :  { %520 = vmatmul.mubr.bf16.vlgmr.msra.gmra.mrb[4].mxu1 %v283_v50 }
 0x295   :  { %v389_v52 = vpop.f32.mrb[4].mxu1 }
 0x296   :  { %v390_v53 = vadd.f32 %v434_v51, %v389_v52  ;;  %v521_v54 = vpop.f32.mrb[5].mxu1 }
 0x297   :  { %v392_v55 = vpop.f32.mrb[6].mxu1 }
 0x298   :  { %v396_v56 = vadd.f32 %v390_v53, %v166_v36  ;;  %v393_v57 = vadd.f32 %v434_v51, %v392_v55  ;;  %v522_v58 = vpop.f32.mrb[7].mxu1 }
 0x29a   :  { %398 = vst [vmem:[#allocation2] sm:$0xff] %v396_v56  ;;  %v397_v59 = vadd.f32 %v393_v57, %v167_v37 }
 0x29c   :  { %399 = vst [vmem:[#allocation2 + $0x8] sm:$0xff] %v397_v59 }
 0x29d   :  { %559 = shalt.err (!%p556_p4)
}
 0x29e   :  { %s560_s9 = scalar_lea.hbm %s751_s8, 256 }
 0x29f   :  { %p561_p5 = scmp.ne.s32.totalorder %s751_s8, %s560_s9  ;;  %p564_p6 = scmp.lt.u32.totalorder %s560_s9, %s751_s8 }
 0x2a1   :  { %p566_p7 = pnand %p564_p6, %p561_p5 }
 0x2a3   :  { %569 = shalt.err (!%p566_p7)
}
 0x2a4   :  { %s575_s14 = smov 128   ;;  %s576_s2 = smov 8  }
 0x2a5   :  { %411 = dma.vmem_to_hbm [thread:$0]  %s406_s29, 256, %s751_s8, [#allocation3], %s575_s14, %s575_s14, %s576_s2  }
 0x2a6   :  { %570 = dma.done.wait [#allocation3], 256  }
 0x2a7   :  { %571 = vsyncadd [#allocation3], 4294967040 }
 0x2a8   :  { %415 = vsyncpa [#allocation3], 1 }

</bundles_post_ra>
